<compile_context>
chip_gen: v7x
topology: tpu7x:2x2x1
jax: 0.10.0
libtpu: 0.0.40
codegen_flags: <defaults>
</compile_context>

<pallas_src>
import functools

import jax
import jax.numpy as jnp
from jax.experimental import pallas as pl
from jax.experimental.pallas import tpu as pltpu


DEFAULT_TM = 256
DEFAULT_TN = 512
DEFAULT_TK = 1024


def _round_up(x: int, m: int) -> int:
    return ((x + m - 1) // m) * m


def _choose_nk_tiles(N: int, K: int, tn: int, tk: int):
    """Pick lane-aligned (tn, tk) tiles and the padded N/K extents."""
    tn_eff = min(tn, _round_up(N, 128))
    tk_eff = min(tk, _round_up(K, 128))
    Np = _round_up(N, tn_eff)
    Kp = _round_up(K, tk_eff)
    # v7x megacore: make sure a "parallel" axis has >=2 blocks when the
    # output is wide enough, so the second TensorCore is not idle.
    if Np == tn_eff and tn_eff >= 256 and (tn_eff // 2) % 128 == 0:
        tn_eff //= 2
    return tn_eff, tk_eff, Np, Kp


def prepare_linear_params(weight, bias, *, tn: int = DEFAULT_TN, tk: int = DEFAULT_TK):
    """One-time (module-init) weight/bias preparation.

    weight: (N, K) f32, PyTorch nn.Linear layout.  Returns:
      w_p: (Kp, Np) bf16  -- transposed, tile-aligned, zero-padded
      b_p: (1, Np)  f32   -- tile-aligned, zero-padded
    """
    N, K = weight.shape
    _, _, Np, Kp = _choose_nk_tiles(N, K, tn, tk)
    w_kn = jnp.asarray(weight, jnp.bfloat16).T            # (K, N)
    w_p = jnp.pad(w_kn, ((0, Kp - K), (0, Np - N)))        # (Kp, Np)
    b_p = jnp.pad(jnp.asarray(bias, jnp.float32), (0, Np - N)).reshape(1, Np)
    return w_p, b_p


def _linear_kernel(x_ref, w_ref, b_ref, o_ref):
    # x_ref: (tm, tk) bf16   w_ref: (tk, tn) bf16   b_ref: (1, tn) f32
    # o_ref: (tm, tn) f32 -- block index constant across k, so it stays
    # resident in VMEM for the whole reduction and doubles as the accumulator.
    k = pl.program_id(2)

    @pl.when(k == 0)
    def _init():
        # Fold the bias into the accumulator init (added exactly once).
        o_ref[...] = jnp.broadcast_to(b_ref[...], o_ref.shape).astype(jnp.float32)

    o_ref[...] += jnp.dot(
        x_ref[...], w_ref[...], preferred_element_type=jnp.float32
    )


def _linear_forward_impl(x, w_p, b_p, out_features, tm, tn, tk):
    orig_shape = x.shape
    K = orig_shape[-1]
    x2 = x.reshape(-1, K)
    B = x2.shape[0]

    tn_eff, tk_eff, Np, Kp = _choose_nk_tiles(out_features, K, tn, tk)
    assert (Kp, Np) == w_p.shape, "prepared weight does not match tile config"

    # bf16 packs 16 rows per vreg -> keep tm a multiple of 16.
    tm_eff = min(tm, _round_up(B, 16))
    Mp = _round_up(B, tm_eff)

    x_bf = x2.astype(jnp.bfloat16)
    if (Mp, Kp) != (B, K):
        # Zero-padding of K is required for correctness of the reduction;
        # skipped entirely when shapes are already tile-aligned.
        x_bf = jnp.pad(x_bf, ((0, Mp - B), (0, Kp - K)))

    grid = (Mp // tm_eff, Np // tn_eff, Kp // tk_eff)

    cost = pl.CostEstimate(
        flops=2 * B * K * out_features,
        transcendentals=0,
        bytes_accessed=2 * (B * K + K * out_features)
        + 4 * (out_features + B * out_features),
    )

    out_p = pl.pallas_call(
        _linear_kernel,
        out_shape=jax.ShapeDtypeStruct((Mp, Np), jnp.float32),
        grid_spec=pltpu.PrefetchScalarGridSpec(
            num_scalar_prefetch=0,
            grid=grid,
            in_specs=[
                pl.BlockSpec((tm_eff, tk_eff), lambda i, j, k: (i, k)),   # x  (M, K)
                pl.BlockSpec((tk_eff, tn_eff), lambda i, j, k: (k, j)),   # W  (K, N)
                pl.BlockSpec((1, tn_eff), lambda i, j, k: (0, j)),        # bias
            ],
            out_specs=pl.BlockSpec((tm_eff, tn_eff), lambda i, j, k: (i, j)),
        ),
        compiler_params=pltpu.CompilerParams(
            dimension_semantics=("parallel", "parallel", "arbitrary"),
            vmem_limit_bytes=32 * 1024 * 1024,
        ),
        cost_estimate=cost,
    )(x_bf, w_p, b_p)

    if (Mp, Np) != (B, out_features):
        out_p = out_p[:B, :out_features]
    return out_p.reshape(*orig_shape[:-1], out_features)


@functools.partial(jax.jit, static_argnames=("out_features", "tm", "tn", "tk"))
def linear_forward(x, w_prepared, b_prepared, out_features,
                   *, tm=DEFAULT_TM, tn=DEFAULT_TN, tk=DEFAULT_TK):
    return _linear_forward_impl(x, w_prepared, b_prepared, out_features, tm, tn, tk)


class PallasLinear:
    """Mirrors the PyTorch wrapper: holds prepared params, forward = x @ W.T + b."""

    def __init__(self, weight, bias, *, tm=DEFAULT_TM, tn=DEFAULT_TN, tk=DEFAULT_TK):
        self.out_features, self.in_features = weight.shape
        self.tm, self.tn, self.tk = tm, tn, tk
        # One-time prep (outside the hot path): bf16, (K, N), tile-aligned.
        self.w_p, self.b_p = prepare_linear_params(weight, bias, tn=tn, tk=tk)

    def __call__(self, x):
        return linear_forward(x, self.w_p, self.b_p, self.out_features,
                              tm=self.tm, tn=self.tn, tk=self.tk)


if __name__ == "__main__":
    # Deterministic parameter / input construction (synthetic, no checkpoint).
    batch = 8
    in_features = 32
    out_features = 64

    key = jax.random.PRNGKey(0)
    kx, kw, kb = jax.random.split(key, 3)

    x = jax.random.normal(kx, (batch, in_features), dtype=jnp.float32)
    # nn.Linear default init range ~ U(-1/sqrt(in), 1/sqrt(in)).
    bound = 1.0 / (in_features ** 0.5)
    weight = jax.random.uniform(
        kw, (out_features, in_features), minval=-bound, maxval=bound,
        dtype=jnp.float32)
    bias = jax.random.uniform(
        kb, (out_features,), minval=-bound, maxval=bound, dtype=jnp.float32)

    module = PallasLinear(weight, bias)
    out = module(x)
    out = jax.block_until_ready(out)
    assert out.shape == (batch, out_features)

    # Reference checks (same semantics as torch nn.Linear).
    ref_f32 = x @ weight.T + bias
    ref_bf16 = jnp.dot(
        x.astype(jnp.bfloat16), weight.astype(jnp.bfloat16).T,
        preferred_element_type=jnp.float32) + bias

    # Kernel uses bf16 MXU operands with f32 accumulation, so compare tightly
    # against the bf16 reference and loosely against the pure-f32 reference.
    # TODO(synk): bit-exact f32 parity with torch would require f32 MXU feed.
    assert jnp.allclose(out, ref_bf16, atol=1e-3, rtol=1e-3)
    assert jnp.allclose(out, ref_f32, atol=5e-2, rtol=5e-2)

    print("KERNEL_OK")
</pallas_src>

<mosaic_0001>
module attributes {stable_mosaic.version = 11 : i64} {
  func.func @_linear_kernel(%arg0: i32, %arg1: i32, %arg2: i32, %arg3: memref<16x128xbf16, #tpu.memory_space<vmem>>, %arg4: memref<128x128xbf16, #tpu.memory_space<vmem>>, %arg5: memref<1x128xf32, #tpu.memory_space<vmem>>, %arg6: memref<16x128xf32, #tpu.memory_space<vmem>>) attributes {dimension_semantics = [#tpu.dimension_semantics<parallel>, #tpu.dimension_semantics<parallel>, #tpu.dimension_semantics<arbitrary>], iteration_bounds = array<i64: 1, 1, 1>, scalar_prefetch = 0 : i64, scratch_operands = 0 : i64, tpu.core_type = #tpu.core_type<tc>, window_params = [{transform_indices = @transform_0, window_bounds = array<i64: 16, 128>}, {transform_indices = @transform_1, window_bounds = array<i64: 128, 128>}, {transform_indices = @transform_2, window_bounds = array<i64: 1, 128>}, {transform_indices = @transform_3, window_bounds = array<i64: 16, 128>}]} {
    %c0_i32 = arith.constant 0 : i32
    %0 = arith.cmpi eq, %arg2, %c0_i32 : i32
    %1 = arith.extui %0 : i1 to i32
    %c0_i32_0 = arith.constant 0 : i32
    %2 = arith.cmpi ne, %1, %c0_i32_0 : i32
    scf.if %2 {
      %c0_8 = arith.constant 0 : index
      %c0_9 = arith.constant 0 : index
      %9 = vector.load %arg5[%c0_8, %c0_9] : memref<1x128xf32, #tpu.memory_space<vmem>>, vector<1x128xf32>
      %10 = vector.shape_cast %9 : vector<1x128xf32> to vector<1x128xf32>
      %11 = vector.broadcast %10 : vector<1x128xf32> to vector<16x128xf32>
      %c0_10 = arith.constant 0 : index
      %c0_11 = arith.constant 0 : index
      %12 = vector.load %arg6[%c0_10, %c0_11] : memref<16x128xf32, #tpu.memory_space<vmem>>, vector<16x128xf32>
      tpu.vector_store %arg6[%c0_10, %c0_11], %11 {strides = array<i32>} : memref<16x128xf32, #tpu.memory_space<vmem>>, vector<16x128xf32>,
    } else {
    }
    %c0 = arith.constant 0 : index
    %c0_1 = arith.constant 0 : index
    %3 = vector.load %arg6[%c0, %c0_1] : memref<16x128xf32, #tpu.memory_space<vmem>>, vector<16x128xf32>
    %c0_2 = arith.constant 0 : index
    %c0_3 = arith.constant 0 : index
    %4 = vector.load %arg3[%c0_2, %c0_3] : memref<16x128xbf16, #tpu.memory_space<vmem>>, vector<16x128xbf16>
    %c0_4 = arith.constant 0 : index
    %c0_5 = arith.constant 0 : index
    %5 = vector.load %arg4[%c0_4, %c0_5] : memref<128x128xbf16, #tpu.memory_space<vmem>>, vector<128x128xbf16>
    %cst = arith.constant dense<0.000000e+00> : vector<16x128xf32>
    %6 = tpu.matmul %4, %5, %cst {dimension_numbers = #tpu.dot_dimension_numbers<[1], [0], [0], [1], [0, 0, 1, 1], [], []>} : vector<16x128xbf16>, vector<128x128xbf16>, vector<16x128xf32> -> vector<16x128xf32>
    %7 = arith.addf %3, %6 : vector<16x128xf32>
    %c0_6 = arith.constant 0 : index
    %c0_7 = arith.constant 0 : index
    %8 = vector.load %arg6[%c0_6, %c0_7] : memref<16x128xf32, #tpu.memory_space<vmem>>, vector<16x128xf32>
    tpu.vector_store %arg6[%c0_6, %c0_7], %7 {strides = array<i32>} : memref<16x128xf32, #tpu.memory_space<vmem>>, vector<16x128xf32>,
    return
  }
  func.func @transform_0(%arg0: i32, %arg1: i32, %arg2: i32) -> (i32, i32) {
    %c0_i32 = arith.constant 0 : i32
    return %arg0, %arg2 : i32, i32
  }
  func.func @transform_1(%arg0: i32, %arg1: i32, %arg2: i32) -> (i32, i32) {
    %c0_i32 = arith.constant 0 : i32
    return %arg2, %arg1 : i32, i32
  }
  func.func @transform_2(%arg0: i32, %arg1: i32, %arg2: i32) -> (i32, i32) {
    %c0_i32 = arith.constant 0 : i32
    %c0_i32_0 = arith.constant 0 : i32
    return %c0_i32, %arg1 : i32, i32
  }
  func.func @transform_3(%arg0: i32, %arg1: i32, %arg2: i32) -> (i32, i32) {
    %c0_i32 = arith.constant 0 : i32
    return %arg0, %arg1 : i32, i32
  }
}

</mosaic_0001>

<bundles_post_ra>
// kernel: linear_forward.1
= control target key start
LH: loop header
LB: loop body
LE: loop exit
PB: predicated region body
PF: predicated region fallthrough
CT: control target
= control target key end

     0   :  { %8 = vsyncpa [#allocation3], 0  ;;  %s243_s12 = smov [#allocation2]   ;;  %s292_s0 = inlined_call_operand.vmem [shape: bf16[16,128], index: 0, kind: input, shape index: {}]   ;;  %s293_s1 = inlined_call_operand.hbm [shape: bf16[128,128], index: 1, kind: input, shape index: {}]   ;;  %s294_s2 = inlined_call_operand.vmem [shape: f32[1,128], index: 2, kind: input, shape index: {}]   ;;  %s295_s3 = inlined_call_operand.vmem [shape: f32[16,128], index: 3, kind: output, shape index: {}]  }
   0x1   :  { %s16_s13 = sshll.u32 %s243_s12, 4  ;;  %s219_s16 = scalar_lea.hbm %s293_s1, 1024  ;;  %s17_s13 = int_to_ptr.vmem [resolvable:$true] %s16_s13 }
   0x2   :  { %p220_p0 = scmp.ne.s32.totalorder %s293_s1, %s219_s16  ;;  %p223_p1 = scmp.lt.u32.totalorder %s219_s16, %s293_s1 }
   0x4   :  { %p225_p2 = pnand %p223_p1, %p220_p0 }
   0x6   :  { %228 = shalt.err (!%p225_p2)
}
   0x7   :  { %s229_s21 = scalar_lea.vmem %s17_s13, 1024  ;;  %p234_p4 = scmp.lt.s32.totalorder %s17_s13, %s17_s13 }
   0x8   :  { %p230_p3 = scmp.ne.s32.totalorder %s17_s13, %s229_s21  ;;  %p235_p5 = scmp.lt.s32.totalorder %s229_s21, %s229_s21 }
   0xa   :  { %p236_p6 = por %p235_p5, %p234_p4 }
   0xc   :  { %p237_p7 = pnand %p236_p6, %p230_p3 }
   0xe   :  { %240 = shalt.err (!%p237_p7)
}
   0xf   :  { %s244_s22 = smov 64   ;;  %s245_s23 = smov 4  }
  0x10   :  { %22 = dma.hbm_to_vmem [thread:$0]  %s293_s1, 1024, %s17_s13, [#allocation3], %s244_s22, %s244_s22, %s245_s23  }
  0x11   :  { %241 = dma.done.wait [#allocation3], 1024  }
  0x12   :  { %242 = vsyncadd [#allocation3], 4294966272  ;;  %v246_v0 = vmov 0.0   ;;  %vm247_vm0 = vmmov 0   ;;  %v210_v1 = vld [vmem:[#allocation2] sm:$0xff]   ;;  %v211_v2 = vld [vmem:[#allocation2 + $0x8] sm:$0xff]  }
  0x13   :  { %185 = vmatprep.subr.bf16.mxu0 %v246_v0  ;;  %201 = vmatprep.mubr.msk.bf16.mxu0 %vm247_vm0, %v246_v0  ;;  %v212_v3 = vld [vmem:[#allocation2 + $0x10] sm:$0xff]   ;;  %v213_v4 = vld [vmem:[#allocation2 + $0x18] sm:$0xff]   ;;  %v214_v5 = vld [vmem:[#allocation2 + $0x20] sm:$0xff]  }
  0x14   :  { %186 = vmatpush3.bf16.msra.mxu0 %v210_v1  ;;  %v215_v6 = vld [vmem:[#allocation2 + $0x28] sm:$0xff]   ;;  %v216_v7 = vld [vmem:[#allocation2 + $0x30] sm:$0xff]   ;;  %v217_v8 = vld [vmem:[#allocation2 + $0x38] sm:$0xff]  }
  0x15   :  { %187 = vmatprep.subr.bf16.mxu0 %v246_v0  ;;  %v218_v9 = vld [vmem:[%s292_s0] sm:$0xff]  }
  0x16   :  { %v166_v10 = vld [vmem:[%s294_s2] ss:$0 sm:$0xff] }
  0x18   :  { %188 = vmatpush3.bf16.msra.mxu0 %v211_v2 }
  0x19   :  { %189 = vmatprep.subr.bf16.mxu0 %v246_v0 }
  0x1c   :  { %190 = vmatpush3.bf16.msra.mxu0 %v212_v3 }
  0x1d   :  { %191 = vmatprep.subr.bf16.mxu0 %v246_v0 }
  0x20   :  { %192 = vmatpush3.bf16.msra.mxu0 %v213_v4 }
  0x21   :  { %193 = vmatprep.subr.bf16.mxu0 %v246_v0 }
  0x24   :  { %194 = vmatpush3.bf16.msra.mxu0 %v214_v5 }
  0x25   :  { %195 = vmatprep.subr.bf16.mxu0 %v246_v0 }
  0x28   :  { %196 = vmatpush3.bf16.msra.mxu0 %v215_v6 }
  0x29   :  { %197 = vmatprep.subr.bf16.mxu0 %v246_v0 }
  0x2c   :  { %198 = vmatpush3.bf16.msra.mxu0 %v216_v7 }
  0x2d   :  { %199 = vmatprep.subr.bf16.mxu0 %v246_v0 }
  0x30   :  { %200 = vmatpush3.bf16.msra.mxu0 %v217_v8 }
  0x33   :  { %202 = vmatmul.mubr.bf16.vlgmr.msra.gmra.mrb[0].mxu0 %v218_v9 }
 0x106   :  { %v150_v11 = vpop.f32.mrb[0].mxu0 }
 0x107   :  { %v157_v12 = vadd.f32 %v166_v10, %v150_v11  ;;  %v203_v13 = vpop.f32.mrb[1].mxu0 }
 0x108   :  { %v153_v14 = vpop.f32.mrb[2].mxu0 }
 0x109   :  { %159 = vst [vmem:[%s295_s3] sm:$0xff] %v157_v12  ;;  %v158_v15 = vadd.f32 %v166_v10, %v153_v14  ;;  %v204_v16 = vpop.f32.mrb[3].mxu0 }
 0x10b   :  { %160 = vst [vmem:[%s295_s3 + $0x8] sm:$0xff] %v158_v15 }
 0x10c   :  { %165 = vsyncpa [#allocation3], 1 }

</bundles_post_ra>
